<compile_context>
chip_gen: v7x
topology: tpu7x:2x2x1
jax: 0.10.0
libtpu: 0.0.40
codegen_flags: <defaults>
</compile_context>

<pallas_src>
import jax
import jax.numpy as jnp
from jax.experimental import pallas as pl
from jax.experimental.pallas import tpu as pltpu

# Logical / padded layer widths.
H1, H1P = 400, 512          # first hidden width, padded to a lane multiple of 128
H2, H2P = 300, 384          # second hidden width, padded
OUTP = 128                  # padded output lanes (real q is column 0)

WEIGHT_DTYPE = jnp.bfloat16  # MXU input dtype (f32 accumulation inside the kernel)


def _round_up(n, m):
    return ((n + m - 1) // m) * m


def critic_kernel(x_ref, u_ref, w1_ref, b1_ref, w2a_ref, w2b_ref, b2_ref,
                  w3_ref, b3_ref, o_ref):
    # Cast activations to the weight dtype (bf16) for the MXU; accumulate in f32.
    xb = x_ref[...].astype(w1_ref.dtype)
    ub = u_ref[...].astype(w2b_ref.dtype)

    # h1 = relu(x @ W1 + b1)                               (TB, 512)
    h1 = jnp.dot(xb, w1_ref[...], preferred_element_type=jnp.float32)
    h1 = jnp.maximum(h1 + b1_ref[...], 0.0)

    # h2 = relu(cat([h1, u], 1) @ W2 + b2)
    #    = relu(h1 @ W2a + u @ W2b + b2)                    (TB, 384)
    h2 = jnp.dot(h1.astype(w2a_ref.dtype), w2a_ref[...],
                 preferred_element_type=jnp.float32)
    h2 = h2 + jnp.dot(ub, w2b_ref[...], preferred_element_type=jnp.float32)
    h2 = jnp.maximum(h2 + b2_ref[...], 0.0)

    # q = h2 @ W3 + b3   (lane-dense (TB, 128) store; real q lives in column 0)
    q = jnp.dot(h2.astype(w3_ref.dtype), w3_ref[...],
                preferred_element_type=jnp.float32)
    o_ref[...] = q + b3_ref[...]


def critic_forward(x, u, params):
    """x: (B, state_dim) f32, u: (B, action_dim) f32 -> (B, 1) f32."""
    w1, b1, w2a, w2b, b2, w3, b3 = params
    B, state_dim = x.shape
    action_dim = u.shape[1]

    # Batch tile: large enough to fill MXU rows at big B, clamped for small B.
    TB = min(256, _round_up(B, 8))
    B_pad = _round_up(B, TB)
    if B_pad != B:
        x = jnp.pad(x, ((0, B_pad - B), (0, 0)))
        u = jnp.pad(u, ((0, B_pad - B), (0, 0)))
    grid = (B_pad // TB,)

    def act_spec(d):
        return pl.BlockSpec((TB, d), lambda i: (i, 0))

    def resident_spec(shape):
        # Constant block index -> weight/bias stays VMEM-resident across grid steps.
        return pl.BlockSpec(shape, lambda i: (0, 0))

    in_specs = [
        act_spec(state_dim),                 # x
        act_spec(action_dim),                # u
        resident_spec(w1.shape),             # W1  (state_dim, 512)
        resident_spec(b1.shape),             # b1  (1, 512)
        resident_spec(w2a.shape),            # W2a (512, 384)
        resident_spec(w2b.shape),            # W2b (action_dim, 384)
        resident_spec(b2.shape),             # b2  (1, 384)
        resident_spec(w3.shape),             # W3  (384, 128)
        resident_spec(b3.shape),             # b3  (1, 128)
    ]
    out_spec = pl.BlockSpec((TB, OUTP), lambda i: (i, 0))

    flops = 2 * B_pad * (state_dim * H1P + H1P * H2P + action_dim * H2P + H2P * OUTP)
    weight_bytes = sum(int(p.size) * p.dtype.itemsize for p in params)
    act_bytes = (x.size + u.size + B_pad * OUTP) * 4
    cost = pl.CostEstimate(flops=flops, transcendentals=0,
                           bytes_accessed=weight_bytes + act_bytes)

    out = pl.pallas_call(
        critic_kernel,
        out_shape=jax.ShapeDtypeStruct((B_pad, OUTP), jnp.float32),
        grid=grid,
        in_specs=in_specs,
        out_specs=out_spec,
        compiler_params=pltpu.CompilerParams(
            dimension_semantics=("parallel",),
            vmem_limit_bytes=64 * 1024 * 1024,
        ),
        cost_estimate=cost,
    )(x, u, w1, b1, w2a, w2b, b2, w3, b3)

    return out[:B, :1]


def init_critic_params(key, state_dim, action_dim):
    """nn.Linear default init U(-1/sqrt(fan_in), 1/sqrt(fan_in)), stored as
    (in_features, out_features), zero-padded to lane-dense widths.
    Weights in bf16 (MXU input dtype), biases in f32."""
    k1w, k1b, k2w, k2b, k3w, k3b = jax.random.split(key, 6)

    def u(k, shape, fan_in):
        bound = 1.0 / (fan_in ** 0.5)
        return jax.random.uniform(k, shape, jnp.float32, -bound, bound)

    # Layer 1: (state_dim, 400) -> pad columns to 512.
    w1 = u(k1w, (state_dim, H1), state_dim)
    b1 = u(k1b, (1, H1), state_dim)
    w1 = jnp.pad(w1, ((0, 0), (0, H1P - H1)))
    b1 = jnp.pad(b1, ((0, 0), (0, H1P - H1)))

    # Layer 2: (400 + action_dim, 300) split into W2a / W2b, padded to (512/ad, 384).
    fan2 = H1 + action_dim
    w2 = u(k2w, (fan2, H2), fan2)
    b2 = u(k2b, (1, H2), fan2)
    w2a = jnp.pad(w2[:H1, :], ((0, H1P - H1), (0, H2P - H2)))
    w2b = jnp.pad(w2[H1:, :], ((0, 0), (0, H2P - H2)))
    b2 = jnp.pad(b2, ((0, 0), (0, H2P - H2)))

    # Layer 3: (300, 1) -> pad to (384, 128).
    w3 = u(k3w, (H2, 1), H2)
    b3 = u(k3b, (1, 1), H2)
    w3 = jnp.pad(w3, ((0, H2P - H2), (0, OUTP - 1)))
    b3 = jnp.pad(b3, ((0, 0), (0, OUTP - 1)))

    cast = lambda w: w.astype(WEIGHT_DTYPE)
    return (cast(w1), b1, cast(w2a), cast(w2b), b2, cast(w3), b3)


def critic_reference(x, u, params):
    """Pure-JAX f32 reference of the PyTorch forward (using the same stored params)."""
    w1, b1, w2a, w2b, b2, w3, b3 = (p.astype(jnp.float32) for p in params)
    h1 = jax.nn.relu(x @ w1 + b1)
    h2 = jax.nn.relu(h1 @ w2a + u @ w2b + b2)
    q = h2 @ w3 + b3
    return q[:, :1]


if __name__ == "__main__":
    key = jax.random.PRNGKey(0)
    kp, kx, ku, kx2, ku2 = jax.random.split(key, 5)

    state_dim = 16
    action_dim = 4
    params = init_critic_params(kp, state_dim, action_dim)

    # Small batch (single grid step).
    batch = 8
    x = jax.random.normal(kx, (batch, state_dim), jnp.float32)
    u = jax.random.normal(ku, (batch, action_dim), jnp.float32)
    q = jax.block_until_ready(critic_forward(x, u, params))
    q_ref = critic_reference(x, u, params)
    assert q.shape == (batch, 1)
    assert jnp.allclose(q, q_ref, atol=2e-2, rtol=2e-2), "small-batch mismatch"

    # Ragged larger batch (exercises grid > 1 + batch padding path).
    batch2 = 300
    x2 = jax.random.normal(kx2, (batch2, state_dim), jnp.float32)
    u2 = jax.random.normal(ku2, (batch2, action_dim), jnp.float32)
    q2 = jax.block_until_ready(critic_forward(x2, u2, params))
    q2_ref = critic_reference(x2, u2, params)
    assert q2.shape == (batch2, 1)
    assert jnp.allclose(q2, q2_ref, atol=2e-2, rtol=2e-2), "large-batch mismatch"

    print("KERNEL_OK")
</pallas_src>

<mosaic_0001>
module attributes {stable_mosaic.version = 11 : i64} {
  func.func @critic_kernel(%arg0: i32, %arg1: memref<8x16xf32, #tpu.memory_space<vmem>>, %arg2: memref<8x4xf32, #tpu.memory_space<vmem>>, %arg3: memref<16x512xbf16, #tpu.memory_space<vmem>>, %arg4: memref<1x512xf32, #tpu.memory_space<vmem>>, %arg5: memref<512x384xbf16, #tpu.memory_space<vmem>>, %arg6: memref<4x384xbf16, #tpu.memory_space<vmem>>, %arg7: memref<1x384xf32, #tpu.memory_space<vmem>>, %arg8: memref<384x128xbf16, #tpu.memory_space<vmem>>, %arg9: memref<1x128xf32, #tpu.memory_space<vmem>>, %arg10: memref<8x128xf32, #tpu.memory_space<vmem>>) attributes {dimension_semantics = [#tpu.dimension_semantics<parallel>], iteration_bounds = array<i64: 1>, scalar_prefetch = 0 : i64, scratch_operands = 0 : i64, tpu.core_type = #tpu.core_type<tc>, window_params = [{transform_indices = @transform_0, window_bounds = array<i64: 8, 16>}, {transform_indices = @transform_1, window_bounds = array<i64: 8, 4>}, {pipeline_mode = #tpu.pipeline_mode<synchronous>, transform_indices = @transform_2, window_bounds = array<i64: 16, 512>}, {pipeline_mode = #tpu.pipeline_mode<synchronous>, transform_indices = @transform_3, window_bounds = array<i64: 1, 512>}, {pipeline_mode = #tpu.pipeline_mode<synchronous>, transform_indices = @transform_4, window_bounds = array<i64: 512, 384>}, {pipeline_mode = #tpu.pipeline_mode<synchronous>, transform_indices = @transform_5, window_bounds = array<i64: 4, 384>}, {pipeline_mode = #tpu.pipeline_mode<synchronous>, transform_indices = @transform_6, window_bounds = array<i64: 1, 384>}, {pipeline_mode = #tpu.pipeline_mode<synchronous>, transform_indices = @transform_7, window_bounds = array<i64: 384, 128>}, {pipeline_mode = #tpu.pipeline_mode<synchronous>, transform_indices = @transform_8, window_bounds = array<i64: 1, 128>}, {transform_indices = @transform_9, window_bounds = array<i64: 8, 128>}]} {
    %c0 = arith.constant 0 : index
    %c0_0 = arith.constant 0 : index
    %0 = vector.load %arg1[%c0, %c0_0] : memref<8x16xf32, #tpu.memory_space<vmem>>, vector<8x16xf32>
    %1 = arith.truncf %0 : vector<8x16xf32> to vector<8x16xbf16>
    %c0_1 = arith.constant 0 : index
    %c0_2 = arith.constant 0 : index
    %2 = vector.load %arg2[%c0_1, %c0_2] : memref<8x4xf32, #tpu.memory_space<vmem>>, vector<8x4xf32>
    %3 = arith.truncf %2 : vector<8x4xf32> to vector<8x4xbf16>
    %c0_3 = arith.constant 0 : index
    %c0_4 = arith.constant 0 : index
    %4 = vector.load %arg3[%c0_3, %c0_4] : memref<16x512xbf16, #tpu.memory_space<vmem>>, vector<16x512xbf16>
    %cst = arith.constant dense<0.000000e+00> : vector<8x512xf32>
    %5 = tpu.matmul %1, %4, %cst {dimension_numbers = #tpu.dot_dimension_numbers<[1], [0], [0], [1], [0, 0, 1, 1], [], []>} : vector<8x16xbf16>, vector<16x512xbf16>, vector<8x512xf32> -> vector<8x512xf32>
    %c0_5 = arith.constant 0 : index
    %c0_6 = arith.constant 0 : index
    %6 = vector.load %arg4[%c0_5, %c0_6] : memref<1x512xf32, #tpu.memory_space<vmem>>, vector<1x512xf32>
    %7 = vector.broadcast %6 : vector<1x512xf32> to vector<8x512xf32>
    %8 = arith.addf %5, %7 : vector<8x512xf32>
    %cst_7 = arith.constant 0.000000e+00 : f32
    %9 = vector.broadcast %cst_7 : f32 to vector<8x512xf32>
    %10 = arith.maximumf %8, %9 : vector<8x512xf32>
    %11 = arith.truncf %10 : vector<8x512xf32> to vector<8x512xbf16>
    %c0_8 = arith.constant 0 : index
    %c0_9 = arith.constant 0 : index
    %12 = vector.load %arg5[%c0_8, %c0_9] : memref<512x384xbf16, #tpu.memory_space<vmem>>, vector<512x384xbf16>
    %cst_10 = arith.constant dense<0.000000e+00> : vector<8x384xf32>
    %13 = tpu.matmul %11, %12, %cst_10 {dimension_numbers = #tpu.dot_dimension_numbers<[1], [0], [0], [1], [0, 0, 1, 1], [], []>} : vector<8x512xbf16>, vector<512x384xbf16>, vector<8x384xf32> -> vector<8x384xf32>
    %c0_11 = arith.constant 0 : index
    %c0_12 = arith.constant 0 : index
    %14 = vector.load %arg6[%c0_11, %c0_12] : memref<4x384xbf16, #tpu.memory_space<vmem>>, vector<4x384xbf16>
    %cst_13 = arith.constant dense<0.000000e+00> : vector<8x384xf32>
    %15 = tpu.matmul %3, %14, %cst_13 {dimension_numbers = #tpu.dot_dimension_numbers<[1], [0], [0], [1], [0, 0, 1, 1], [], []>} : vector<8x4xbf16>, vector<4x384xbf16>, vector<8x384xf32> -> vector<8x384xf32>
    %16 = arith.addf %13, %15 : vector<8x384xf32>
    %c0_14 = arith.constant 0 : index
    %c0_15 = arith.constant 0 : index
    %17 = vector.load %arg7[%c0_14, %c0_15] : memref<1x384xf32, #tpu.memory_space<vmem>>, vector<1x384xf32>
    %18 = vector.broadcast %17 : vector<1x384xf32> to vector<8x384xf32>
    %19 = arith.addf %16, %18 : vector<8x384xf32>
    %cst_16 = arith.constant 0.000000e+00 : f32
    %20 = vector.broadcast %cst_16 : f32 to vector<8x384xf32>
    %21 = arith.maximumf %19, %20 : vector<8x384xf32>
    %22 = arith.truncf %21 : vector<8x384xf32> to vector<8x384xbf16>
    %c0_17 = arith.constant 0 : index
    %c0_18 = arith.constant 0 : index
    %23 = vector.load %arg8[%c0_17, %c0_18] : memref<384x128xbf16, #tpu.memory_space<vmem>>, vector<384x128xbf16>
    %cst_19 = arith.constant dense<0.000000e+00> : vector<8x128xf32>
    %24 = tpu.matmul %22, %23, %cst_19 {dimension_numbers = #tpu.dot_dimension_numbers<[1], [0], [0], [1], [0, 0, 1, 1], [], []>} : vector<8x384xbf16>, vector<384x128xbf16>, vector<8x128xf32> -> vector<8x128xf32>
    %c0_20 = arith.constant 0 : index
    %c0_21 = arith.constant 0 : index
    %25 = vector.load %arg9[%c0_20, %c0_21] : memref<1x128xf32, #tpu.memory_space<vmem>>, vector<1x128xf32>
    %26 = vector.broadcast %25 : vector<1x128xf32> to vector<8x128xf32>
    %27 = arith.addf %24, %26 : vector<8x128xf32>
    %c0_22 = arith.constant 0 : index
    %c0_23 = arith.constant 0 : index
    %28 = vector.load %arg10[%c0_22, %c0_23] : memref<8x128xf32, #tpu.memory_space<vmem>>, vector<8x128xf32>
    tpu.vector_store %arg10[%c0_22, %c0_23], %27 {strides = array<i32>} : memref<8x128xf32, #tpu.memory_space<vmem>>, vector<8x128xf32>,
    return
  }
  func.func @transform_0(%arg0: i32) -> (i32, i32) {
    %c0_i32 = arith.constant 0 : i32
    %c0_i32_0 = arith.constant 0 : i32
    return %arg0, %c0_i32 : i32, i32
  }
  func.func @transform_1(%arg0: i32) -> (i32, i32) {
    %c0_i32 = arith.constant 0 : i32
    %c0_i32_0 = arith.constant 0 : i32
    return %arg0, %c0_i32 : i32, i32
  }
  func.func @transform_2(%arg0: i32) -> (i32, i32) {
    %c0_i32 = arith.constant 0 : i32
    %c0_i32_0 = arith.constant 0 : i32
    %c0_i32_1 = arith.constant 0 : i32
    return %c0_i32, %c0_i32_0 : i32, i32
  }
  func.func @transform_3(%arg0: i32) -> (i32, i32) {
    %c0_i32 = arith.constant 0 : i32
    %c0_i32_0 = arith.constant 0 : i32
    %c0_i32_1 = arith.constant 0 : i32
    return %c0_i32, %c0_i32_0 : i32, i32
  }
  func.func @transform_4(%arg0: i32) -> (i32, i32) {
    %c0_i32 = arith.constant 0 : i32
    %c0_i32_0 = arith.constant 0 : i32
    %c0_i32_1 = arith.constant 0 : i32
    return %c0_i32, %c0_i32_0 : i32, i32
  }
  func.func @transform_5(%arg0: i32) -> (i32, i32) {
    %c0_i32 = arith.constant 0 : i32
    %c0_i32_0 = arith.constant 0 : i32
    %c0_i32_1 = arith.constant 0 : i32
    return %c0_i32, %c0_i32_0 : i32, i32
  }
  func.func @transform_6(%arg0: i32) -> (i32, i32) {
    %c0_i32 = arith.constant 0 : i32
    %c0_i32_0 = arith.constant 0 : i32
    %c0_i32_1 = arith.constant 0 : i32
    return %c0_i32, %c0_i32_0 : i32, i32
  }
  func.func @transform_7(%arg0: i32) -> (i32, i32) {
    %c0_i32 = arith.constant 0 : i32
    %c0_i32_0 = arith.constant 0 : i32
    %c0_i32_1 = arith.constant 0 : i32
    return %c0_i32, %c0_i32_0 : i32, i32
  }
  func.func @transform_8(%arg0: i32) -> (i32, i32) {
    %c0_i32 = arith.constant 0 : i32
    %c0_i32_0 = arith.constant 0 : i32
    %c0_i32_1 = arith.constant 0 : i32
    return %c0_i32, %c0_i32_0 : i32, i32
  }
  func.func @transform_9(%arg0: i32) -> (i32, i32) {
    %c0_i32 = arith.constant 0 : i32
    %c0_i32_0 = arith.constant 0 : i32
    return %arg0, %c0_i32 : i32, i32
  }
}

</mosaic_0001>

<bundles_post_ra>
// kernel: tpu_custom_call.1
= control target key start
LH: loop header
LB: loop body
LE: loop exit
PB: predicated region body
PF: predicated region fallthrough
CT: control target
= control target key end

     0   :  { %14 = vsyncpa [#allocation3], 0  ;;  %s2428_s0 = inlined_call_operand.hbm [shape: f32[8,16], index: 0, kind: input, shape index: {}]   ;;  %s2429_s1 = inlined_call_operand.hbm [shape: f32[8,4], index: 1, kind: input, shape index: {}]   ;;  %s2430_s2 = inlined_call_operand.hbm [shape: bf16[16,512], index: 2, kind: input, shape index: {}]   ;;  %s2431_s3 = inlined_call_operand.hbm [shape: f32[1,512], index: 3, kind: input, shape index: {}]   ;;  %s2432_s4 = inlined_call_operand.hbm [shape: bf16[512,384], index: 4, kind: input, shape index: {}]   ;;  %s2433_s5 = inlined_call_operand.hbm [shape: bf16[4,384], index: 5, kind: input, shape index: {}]   ;;  %s2434_s6 = inlined_call_operand.hbm [shape: f32[1,384], index: 6, kind: input, shape index: {}]   ;;  %s2435_s7 = inlined_call_operand.hbm [shape: bf16[384,128], index: 7, kind: input, shape index: {}]   ;;  %s2436_s8 = inlined_call_operand.hbm [shape: f32[1,128], index: 8, kind: input, shape index: {}]   ;;  %s2437_s9 = inlined_call_operand.hbm [shape: f32[8,128], index: 9, kind: output, shape index: {}]  }
   0x1   :  { %15 = vsyncpa [#allocation6], 0 }
   0x2   :  { %16 = vsyncpa [#allocation9], 0 }
   0x3   :  { %17 = vsyncpa [#allocation12], 0 }
   0x4   :  { %18 = vsyncpa [#allocation15], 0 }
   0x5   :  { %19 = vsyncpa [#allocation4], 0  ;;  %s2172_s30 = smov [#allocation5]   ;;  %s2173_s11 = smov [#allocation8]  }
   0x6   :  { %s36_s10 = sshll.u32 %s2172_s30, 4  ;;  %s58_s12 = sshll.u32 %s2173_s11, 4  ;;  %s37_s10 = int_to_ptr.vmem [resolvable:$true] %s36_s10  ;;  %s59_s12 = int_to_ptr.vmem [resolvable:$true] %s58_s12 }
   0x7   :  { %s1940_s15 = scalar_lea.hbm %s2429_s1, 128 }
   0x8   :  { %p1941_p0 = scmp.ne.s32.totalorder %s2429_s1, %s1940_s15  ;;  %p1944_p1 = scmp.lt.u32.totalorder %s1940_s15, %s2429_s1 }
   0xa   :  { %p1946_p2 = pnand %p1944_p1, %p1941_p0 }
   0xc   :  { %1949 = shalt.err (!%p1946_p2)
}
   0xd   :  { %s1950_s20 = scalar_lea.vmem %s37_s10, 128  ;;  %p1955_p4 = scmp.lt.s32.totalorder %s37_s10, %s37_s10 }
   0xe   :  { %p1951_p3 = scmp.ne.s32.totalorder %s37_s10, %s1950_s20  ;;  %p1956_p5 = scmp.lt.s32.totalorder %s1950_s20, %s1950_s20 }
  0x10   :  { %p1957_p6 = por %p1956_p5, %p1955_p4 }
  0x12   :  { %p1958_p7 = pnand %p1957_p6, %p1951_p3 }
  0x14   :  { %1961 = shalt.err (!%p1958_p7)
}
  0x15   :  { %39 = dma.hbm_to_vmem [thread:$0]  %s2429_s1, 128, %s37_s10, [#allocation6]  }
  0x16   :  { %s1962_s25 = scalar_lea.hbm %s2431_s3, 64 }
  0x17   :  { %p1963_p8 = scmp.ne.s32.totalorder %s2431_s3, %s1962_s25  ;;  %p1966_p9 = scmp.lt.u32.totalorder %s1962_s25, %s2431_s3 }
  0x19   :  { %p1968_p10 = pnand %p1966_p9, %p1963_p8 }
  0x1b   :  { %1971 = shalt.err (!%p1968_p10)
}
  0x1c   :  { %s1972_s30 = scalar_lea.vmem %s59_s12, 64  ;;  %p1977_p12 = scmp.lt.s32.totalorder %s59_s12, %s59_s12 }
  0x1d   :  { %p1973_p11 = scmp.ne.s32.totalorder %s59_s12, %s1972_s30  ;;  %p1978_p13 = scmp.lt.s32.totalorder %s1972_s30, %s1972_s30 }
  0x1f   :  { %p1979_p0 = por %p1978_p13, %p1977_p12 }
  0x21   :  { %p1980_p1 = pnand %p1979_p0, %p1973_p11 }
  0x23   :  { %1983 = shalt.err (!%p1980_p1)
}
  0x24   :  { %61 = dma.hbm_to_vmem [thread:$0]  %s2431_s3, 64, %s59_s12, [#allocation9]  }
  0x25   :  { %s2174_s11 = smov [#allocation11]   ;;  %s2175_s14 = smov [#allocation14]  }
  0x26   :  { %s80_s13 = sshll.u32 %s2174_s11, 4  ;;  %s99_s15 = sshll.u32 %s2175_s14, 4  ;;  %s81_s13 = int_to_ptr.vmem [resolvable:$true] %s80_s13  ;;  %s2266_s15 = int_to_ptr.vmem [resolvable:$true] %s99_s15 }
  0x27   :  { %s1984_s18 = scalar_lea.hbm %s2433_s5, 96 }
  0x28   :  { %p1985_p2 = scmp.ne.s32.totalorder %s2433_s5, %s1984_s18  ;;  %p1988_p3 = scmp.lt.u32.totalorder %s1984_s18, %s2433_s5 }
  0x2a   :  { %p1990_p4 = pnand %p1988_p3, %p1985_p2 }
  0x2c   :  { %1993 = shalt.err (!%p1990_p4)
}
  0x2d   :  { %s1994_s3 = scalar_lea.vmem %s81_s13, 96  ;;  %p1999_p6 = scmp.lt.s32.totalorder %s81_s13, %s81_s13 }
  0x2e   :  { %p1995_p5 = scmp.ne.s32.totalorder %s81_s13, %s1994_s3  ;;  %p2000_p7 = scmp.lt.s32.totalorder %s1994_s3, %s1994_s3 }
  0x30   :  { %p2001_p8 = por %p2000_p7, %p1999_p6 }
  0x32   :  { %p2002_p9 = pnand %p2001_p8, %p1995_p5 }
  0x34   :  { %2005 = shalt.err (!%p2002_p9)
}
  0x35   :  { %83 = dma.hbm_to_vmem [thread:$0]  %s2433_s5, 96, %s81_s13, [#allocation12]  }
  0x36   :  { %s2006_s26 = scalar_lea.hbm %s2435_s7, 3072 }
  0x37   :  { %p2007_p10 = scmp.ne.s32.totalorder %s2435_s7, %s2006_s26  ;;  %p2010_p11 = scmp.lt.u32.totalorder %s2006_s26, %s2435_s7 }
  0x39   :  { %p2012_p12 = pnand %p2010_p11, %p2007_p10 }
  0x3b   :  { %2015 = shalt.err (!%p2012_p12)
}
  0x3c   :  { %s2016_s1 = scalar_lea.vmem %s2266_s15, 3072  ;;  %p2021_p0 = scmp.lt.s32.totalorder %s2266_s15, %s2266_s15 }
  0x3d   :  { %p2017_p13 = scmp.ne.s32.totalorder %s2266_s15, %s2016_s1  ;;  %p2022_p1 = scmp.lt.s32.totalorder %s2016_s1, %s2016_s1 }
  0x3f   :  { %p2023_p2 = por %p2022_p1, %p2021_p0 }
  0x41   :  { %p2024_p3 = pnand %p2023_p2, %p2017_p13 }
  0x43   :  { %2027 = shalt.err (!%p2024_p3)
}
  0x44   :  { %s2176_s5 = smov 64   ;;  %s2177_s10 = smov 4  }
  0x45   :  { %105 = dma.hbm_to_vmem [thread:$0]  %s2435_s7, 3072, %s2266_s15, [#allocation15], %s2176_s5, %s2176_s5, %s2177_s10  }
  0x46   :  { %s2178_s14 = smov [#allocation2]   ;;  %s2179_s17 = smov [#allocation7]  }
  0x47   :  { %s26_s16 = sshll.u32 %s2178_s14, 4  ;;  %s45_s18 = sshll.u32 %s2179_s17, 4  ;;  %s27_s16 = int_to_ptr.vmem [resolvable:$true] %s26_s16  ;;  %s2297_s18 = int_to_ptr.vmem [resolvable:$true] %s45_s18 }
  0x48   :  { %s2028_s21 = scalar_lea.hbm %s2428_s0, 128 }
  0x49   :  { %p2029_p4 = scmp.ne.s32.totalorder %s2428_s0, %s2028_s21  ;;  %p2032_p5 = scmp.lt.u32.totalorder %s2028_s21, %s2428_s0 }
  0x4b   :  { %p2034_p6 = pnand %p2032_p5, %p2029_p4 }
  0x4d   :  { %2037 = shalt.err (!%p2034_p6)
}
  0x4e   :  { %s2038_s7 = scalar_lea.vmem %s27_s16, 128  ;;  %p2043_p8 = scmp.lt.s32.totalorder %s27_s16, %s27_s16 }
  0x4f   :  { %p2039_p7 = scmp.ne.s32.totalorder %s27_s16, %s2038_s7  ;;  %p2044_p9 = scmp.lt.s32.totalorder %s2038_s7, %s2038_s7 }
  0x51   :  { %p2045_p10 = por %p2044_p9, %p2043_p8 }
  0x53   :  { %p2046_p11 = pnand %p2045_p10, %p2039_p7 }
  0x55   :  { %2049 = shalt.err (!%p2046_p11)
}
  0x56   :  { %29 = dma.hbm_to_vmem [thread:$0]  %s2428_s0, 128, %s27_s16, [#allocation3]  }
  0x57   :  { %s2050_s27 = scalar_lea.hbm %s2430_s2, 512 }
  0x58   :  { %p2051_p12 = scmp.ne.s32.totalorder %s2430_s2, %s2050_s27  ;;  %p2054_p13 = scmp.lt.u32.totalorder %s2050_s27, %s2430_s2 }
  0x5a   :  { %p2056_p0 = pnand %p2054_p13, %p2051_p12 }
  0x5c   :  { %2059 = shalt.err (!%p2056_p0)
}
  0x5d   :  { %s2060_s5 = scalar_lea.vmem %s2297_s18, 512  ;;  %p2065_p2 = scmp.lt.s32.totalorder %s2297_s18, %s2297_s18 }
  0x5e   :  { %p2061_p1 = scmp.ne.s32.totalorder %s2297_s18, %s2060_s5  ;;  %p2066_p3 = scmp.lt.s32.totalorder %s2060_s5, %s2060_s5 }
  0x60   :  { %p2067_p4 = por %p2066_p3, %p2065_p2 }
  0x62   :  { %p2068_p5 = pnand %p2067_p4, %p2061_p1 }
  0x64   :  { %2071 = shalt.err (!%p2068_p5)
}
  0x65   :  { %s2180_s0 = smov 256   ;;  %s2181_s10 = smov 16  }
  0x66   :  { %51 = dma.hbm_to_vmem [thread:$0]  %s2430_s2, 512, %s2297_s18, [#allocation6], %s2180_s0, %s2180_s0, %s2181_s10  }
  0x67   :  { %s2182_s14 = smov [#allocation10]   ;;  %s2072_s20 = scalar_lea.hbm %s2432_s4, 12288 }
  0x68   :  { %s67_s16 = sshll.u32 %s2182_s14, 4  ;;  %p2073_p6 = scmp.ne.s32.totalorder %s2432_s4, %s2072_s20  ;;  %s68_s16 = int_to_ptr.vmem [resolvable:$true] %s67_s16 }
  0x69   :  { %p2076_p7 = scmp.lt.u32.totalorder %s2072_s20, %s2432_s4 }
  0x6b   :  { %p2078_p8 = pnand %p2076_p7, %p2073_p6 }
  0x6d   :  { %2081 = shalt.err (!%p2078_p8)
}
  0x6e   :  { %s2082_s23 = scalar_lea.vmem %s68_s16, 12288  ;;  %p2087_p10 = scmp.lt.s32.totalorder %s68_s16, %s68_s16 }
  0x6f   :  { %p2083_p9 = scmp.ne.s32.totalorder %s68_s16, %s2082_s23  ;;  %p2088_p11 = scmp.lt.s32.totalorder %s2082_s23, %s2082_s23 }
  0x71   :  { %p2089_p12 = por %p2088_p11, %p2087_p10 }
  0x73   :  { %p2090_p13 = pnand %p2089_p12, %p2083_p9 }
  0x75   :  { %2093 = shalt.err (!%p2090_p13)
}
  0x76   :  { %s2183_s2 = smov 192   ;;  %s2184_s18 = smov 12  }
  0x77   :  { %73 = dma.hbm_to_vmem [thread:$0]  %s2432_s4, 12288, %s68_s16, [#allocation9], %s2183_s2, %s2183_s2, %s2184_s18  }
  0x78   :  { %s2185_s24 = smov [#allocation13]   ;;  %s2186_s26 = smov [#allocation16]  }
  0x79   :  { %s90_s25 = sshll.u32 %s2185_s24, 4  ;;  %s112_s27 = sshll.u32 %s2186_s26, 4  ;;  %s91_s25 = int_to_ptr.vmem [resolvable:$true] %s90_s25  ;;  %s113_s27 = int_to_ptr.vmem [resolvable:$true] %s112_s27 }
  0x7a   :  { %s2094_s30 = scalar_lea.hbm %s2434_s6, 48 }
  0x7b   :  { %p2095_p0 = scmp.ne.s32.totalorder %s2434_s6, %s2094_s30  ;;  %p2098_p1 = scmp.lt.u32.totalorder %s2094_s30, %s2434_s6 }
  0x7d   :  { %p2100_p2 = pnand %p2098_p1, %p2095_p0 }
  0x7f   :  { %2103 = shalt.err (!%p2100_p2)
}
  0x80   :  { %s2104_s4 = scalar_lea.vmem %s91_s25, 48  ;;  %s2108_s11 = scalar_lea.vmem %s91_s25, 64 }
  0x81   :  { %p2105_p3 = scmp.ne.s32.totalorder %s91_s25, %s2104_s4  ;;  %p2109_p4 = scmp.lt.s32.totalorder %s91_s25, %s91_s25 }
  0x82   :  { %p2110_p5 = scmp.lt.s32.totalorder %s2108_s11, %s2104_s4 }
  0x84   :  { %p2111_p6 = por %p2110_p5, %p2109_p4 }
  0x86   :  { %p2112_p7 = pnand %p2111_p6, %p2105_p3 }
  0x88   :  { %2115 = shalt.err (!%p2112_p7)
}
  0x89   :  { %93 = dma.hbm_to_vmem [thread:$0]  %s2434_s6, 48, %s91_s25, [#allocation12]  }
  0x8a   :  { %s2116_s19 = scalar_lea.hbm %s2436_s8, 16 }
  0x8b   :  { %p2117_p8 = scmp.ne.s32.totalorder %s2436_s8, %s2116_s19  ;;  %p2120_p9 = scmp.lt.u32.totalorder %s2116_s19, %s2436_s8 }
  0x8d   :  { %p2122_p10 = pnand %p2120_p9, %p2117_p8 }
  0x8f   :  { %2125 = shalt.err (!%p2122_p10)
}
  0x90   :  { %s2126_s12 = scalar_lea.vmem %s113_s27, 16  ;;  %s2130_s23 = scalar_lea.vmem %s113_s27, 32 }
  0x91   :  { %p2127_p11 = scmp.ne.s32.totalorder %s113_s27, %s2126_s12  ;;  %p2131_p12 = scmp.lt.s32.totalorder %s113_s27, %s113_s27 }
  0x92   :  { %p2132_p13 = scmp.lt.s32.totalorder %s2130_s23, %s2126_s12 }
  0x94   :  { %p2133_p0 = por %p2132_p13, %p2131_p12 }
  0x96   :  { %p2134_p1 = pnand %p2133_p0, %p2127_p11 }
  0x98   :  { %2137 = shalt.err (!%p2134_p1)
}
  0x99   :  { %115 = dma.hbm_to_vmem [thread:$0]  %s2436_s8, 16, %s113_s27, [#allocation15]  }
  0x9a   :  { %2160 = dma.done.wait [#allocation3], 128  }
  0x9b   :  { %2161 = vsyncadd [#allocation3], 4294967168 }
  0x9c   :  { %2162 = dma.done.wait [#allocation6], 640  }
  0x9d   :  { %2163 = vsyncadd [#allocation6], 4294966656 }
  0x9e   :  { %2164 = dma.done.wait [#allocation9], 12352  }
  0x9f   :  { %2165 = vsyncadd [#allocation9], 4294954944 }
  0xa0   :  { %2166 = dma.done.wait [#allocation12], 144  }
  0xa1   :  { %2167 = vsyncadd [#allocation12], 4294967152 }
  0xa2   :  { %2168 = dma.done.wait [#allocation15], 3088  }
  0xa3   :  { %2169 = vsyncadd [#allocation15], 4294964208  ;;  %v154_v0 = vlaneseq  ;;  %v2187_v1 = vmov 0   ;;  %v2188_v2 = vmov 1983009808   ;;  %v144_v11 = vld [vmem:[#allocation2] sm:$0xff] }
  0xa4   :  { %230 = vmatprep.mubr.bf16.mxu0 %v2187_v1  ;;  %271 = vmatprep.mubr.bf16.mxu1 %v2187_v1  ;;  %v420_v3 = vunpack.c.l.s4 %v2188_v2  ;;  %v1781_v6 = vld [vmem:[#allocation7 + $0x4] ss:$16 sps:$4 sm:$0xff]   ;;  %v1783_v8 = vld [vmem:[#allocation7 + $0xc] ss:$16 sps:$4 sm:$0xff]   ;;  %v1785_v9 = vld [vmem:[#allocation7] ss:$16 sps:$4 sm:$0xff]   ;;  %v145_v12 = vpack.c.bf16 %v144_v11, %v144_v11 }
  0xa5   :  { %v2364_v4 = vshrl.u32 %v154_v0, 7  ;;  %198 = vmatprep.subr.bf16.mxu0 %v1781_v6  ;;  %v1786_v10 = vld [vmem:[#allocation7 + $0x8] ss:$16 sps:$4 sm:$0xff]   ;;  %239 = vmatprep.subr.bf16.mxu1 %v1783_v8  ;;  %vm438_vm0 = vcmask 1041408   ;;  %vm194_vm1 = vcmask 130048   ;;  %v2189_v16 = vmov 0.0  }
  0xa6   :  { %v421_v5 = vunpack.c.0.s8 %v420_v3  ;;  %v416_v13 = vld [vmem:[#allocation11] sm:$0x3f]  ;;  %199 = vmatpush1.bf16.msra.mxu0 %v1785_v9  ;;  %240 = vmatpush1.bf16.msra.mxu1 %v1786_v10  ;;  %v146_v23 = vld [vmem:[#allocation5] sm:$0xff]  ;;  %vm2190_vm2 = vmmov 0   ;;  %vm434_vm3 = vcmask 31744   ;;  %s2191_s8 = smov [#allocation17]  }
  0xa7   :  { %v418_v15 = vcombine.high %v416_v13, %v416_v13  ;;  %1735 = vmatprep.subr.bf16.mxu1 %v2189_v16  ;;  %v1790_v20 = vld [vmem:[#allocation10 + $0x4] ss:$12 sps:$4 sm:$0xff]   ;;  %v147_v24 = vpack.c.bf16 %v146_v23, %v146_v23  ;;  %v1788_v25 = vld [vmem:[#allocation10] ss:$12 sps:$4 sm:$0xff]   ;;  %v1796_v27 = vld [vmem:[#allocation10 + $0x1c] ss:$12 sps:$4 sm:$0xff]  }
  0xa8   :  { %v424_v7 = vsub.s32 %v421_v5, %v2364_v4  ;;  %v1793_v21 = vld [vmem:[#allocation10 + $0x184] ss:$12 sps:$4 sm:$0xff]   ;;  %v1791_v26 = vld [vmem:[#allocation10 + $0x180] ss:$12 sps:$4 sm:$0xff]   ;;  %v1799_v28 = vld [vmem:[#allocation10 + $0x19c] ss:$12 sps:$4 sm:$0xff]  }
  0xa9   :  { %1532 = vmatmul.mubr.msk.bf16.vlgmr.msra.gmra.mrb[0].mxu0 %vm194_vm1, %v145_v12  ;;  %1533 = vmatmul.mubr.msk.bf16.vlgmr.msra.gmra.mrb[0].mxu1 %vm194_vm1, %v145_v12  ;;  %v1794_v29 = vld [vmem:[#allocation10 + $0x18] ss:$12 sps:$4 sm:$0xff]   ;;  %v1802_v31 = vld [vmem:[#allocation10 + $0x34] ss:$12 sps:$4 sm:$0xff]   ;;  %v1800_v33 = vld [vmem:[#allocation10 + $0x30] ss:$12 sps:$4 sm:$0xff]  }
  0xaa   :  { %v425_v14 = vrot.slane %v416_v13, %v424_v7  ;;  %v432_v19 = vrot.slane %v418_v15, %v424_v7  ;;  %480 = vmatprep.mubr.bf16.mxu0 %v2187_v1  ;;  %1737 = vmatprep.mubr.msk.bf16.mxu1 %vm2190_vm2, %v2189_v16  ;;  %v1797_v30 = vld [vmem:[#allocation10 + $0x198] ss:$12 sps:$4 sm:$0xff]   ;;  %v1805_v32 = vld [vmem:[#allocation10 + $0x1b4] ss:$12 sps:$4 sm:$0xff]   ;;  %v1803_v34 = vld [vmem:[#allocation10 + $0x1b0] ss:$12 sps:$4 sm:$0xff]  }
  0xab   :  { %v1808_v35 = vld [vmem:[#allocation10 + $0x4c] ss:$12 sps:$4 sm:$0xff]   ;;  %v1806_v37 = vld [vmem:[#allocation10 + $0x48] ss:$12 sps:$4 sm:$0xff]   ;;  %v1814_v39 = vld [vmem:[#allocation10 + $0x64] ss:$12 sps:$4 sm:$0xff]  }
  0xac   :  { %v433_v17 = vcombine.high %v425_v14, %v425_v14  ;;  %v440_v18 = vsel %vm438_vm0, %v425_v14, 0  ;;  %v446_v22 = vsel %vm438_vm0, %v432_v19, 0  ;;  %v1811_v36 = vld [vmem:[#allocation10 + $0x1cc] ss:$12 sps:$4 sm:$0xff]   ;;  %v1809_v38 = vld [vmem:[#allocation10 + $0x1c8] ss:$12 sps:$4 sm:$0xff]  }
  0xad   :  { %1736 = vmatpush3.bf16.msra.mxu1 %v446_v22  ;;  %v1817_v40 = vld [vmem:[#allocation10 + $0x1e4] ss:$12 sps:$4 sm:$0xff]   ;;  %v1812_v41 = vld [vmem:[#allocation10 + $0x60] ss:$12 sps:$4 sm:$0xff]   ;;  %v1820_v43 = vld [vmem:[#allocation10 + $0x7c] ss:$12 sps:$4 sm:$0xff]  }
  0xae   :  { %1534 = vmatprep.subr.msk.bf16.mxu0 %vm438_vm0, %v433_v17  ;;  %1082 = vmatprep.subr.bf16.mxu1 %v1793_v21  ;;  %v1815_v42 = vld [vmem:[#allocation10 + $0x1e0] ss:$12 sps:$4 sm:$0xff]   ;;  %v1823_v44 = vld [vmem:[#allocation10 + $0x1fc] ss:$12 sps:$4 sm:$0xff]   ;;  %v1818_v45 = vld [vmem:[#allocation10 + $0x78] ss:$12 sps:$4 sm:$0xff]  }
  0xaf   :  { %449 = vmatpush1.bf16.msra.mxu0 %v440_v18  ;;  %v1821_v46 = vld [vmem:[#allocation10 + $0x1f8] ss:$12 sps:$4 sm:$0xff]   ;;  %v1826_v47 = vld [vmem:[#allocation10 + $0x94] ss:$12 sps:$4 sm:$0xff]   ;;  %v1824_v49 = vld [vmem:[#allocation10 + $0x90] ss:$12 sps:$4 sm:$0xff]  }
  0xb0   :  { %1041 = vmatprep.subr.bf16.mxu0 %v1790_v20  ;;  %v1829_v48 = vld [vmem:[#allocation10 + $0x214] ss:$12 sps:$4 sm:$0xff]   ;;  %v1827_v50 = vld [vmem:[#allocation10 + $0x210] ss:$12 sps:$4 sm:$0xff]   ;;  %v1832_v51 = vld [vmem:[#allocation10 + $0xac] ss:$12 sps:$4 sm:$0xff]  }
  0xb1   :  { %1738 = vmatmul.mubr.msk.bf16.vlgmr.msra.gmra.mrb[4].mxu1 %vm434_vm3, %v147_v24  ;;  %v1835_v52 = vld [vmem:[#allocation10 + $0x22c] ss:$12 sps:$4 sm:$0xff]   ;;  %v1830_v53 = vld [vmem:[#allocation10 + $0xa8] ss:$12 sps:$4 sm:$0xff]   ;;  %v1838_v55 = vld [vmem:[#allocation10 + $0xc4] ss:$12 sps:$4 sm:$0xff]  }
  0xb2   :  { %1535 = vmatmul.mubr.msk.bf16.vlgmr.msra.gmra.mrb[4].mxu0 %vm434_vm3, %v147_v24  ;;  %1083 = vmatpush1.bf16.msra.mxu1 %v1791_v26  ;;  %v1833_v54 = vld [vmem:[#allocation10 + $0x228] ss:$12 sps:$4 sm:$0xff]   ;;  %v1841_v56 = vld [vmem:[#allocation10 + $0x244] ss:$12 sps:$4 sm:$0xff]   ;;  %v1836_v57 = vld [vmem:[#allocation10 + $0xc0] ss:$12 sps:$4 sm:$0xff]  }
  0xb3   :  { %1042 = vmatpush1.bf16.msra.mxu0 %v1788_v25  ;;  %1084 = vmatprep.subr.bf16.mxu1 %v1799_v28  ;;  %v1839_v58 = vld [vmem:[#allocation10 + $0x240] ss:$12 sps:$4 sm:$0xff]   ;;  %v1844_v59 = vld [vmem:[#allocation10 + $0xdc] ss:$12 sps:$4 sm:$0xff]   ;;  %v1842_v61 = vld [vmem:[#allocation10 + $0xd8] ss:$12 sps:$4 sm:$0xff]  }
  0xb4   :  { %1043 = vmatprep.subr.bf16.mxu0 %v1796_v27  ;;  %v1847_v60 = vld [vmem:[#allocation10 + $0x25c] ss:$12 sps:$4 sm:$0xff]   ;;  %v1845_v62 = vld [vmem:[#allocation10 + $0x258] ss:$12 sps:$4 sm:$0xff]   ;;  %v1850_v63 = vld [vmem:[#allocation10 + $0xf4] ss:$12 sps:$4 sm:$0xff]  }
  0xb5   :  { %v1853_v0 = vld [vmem:[#allocation10 + $0x274] ss:$12 sps:$4 sm:$0xff]   ;;  %v1848_v1 = vld [vmem:[#allocation10 + $0xf0] ss:$12 sps:$4 sm:$0xff]   ;;  %v1856_v3 = vld [vmem:[#allocation10 + $0x10c] ss:$12 sps:$4 sm:$0xff]  }
  0xb6   :  { %1085 = vmatpush1.bf16.msra.mxu1 %v1797_v30  ;;  %v1851_v2 = vld [vmem:[#allocation10 + $0x270] ss:$12 sps:$4 sm:$0xff]   ;;  %v1859_v5 = vld [vmem:[#allocation10 + $0x28c] ss:$12 sps:$4 sm:$0xff]   ;;  %v1854_v6 = vld [vmem:[#allocation10 + $0x108] ss:$12 sps:$4 sm:$0xff]  }
  0xb7   :  { %1044 = vmatpush1.bf16.msra.mxu0 %v1794_v29  ;;  %1086 = vmatprep.subr.bf16.mxu1 %v1805_v32  ;;  %v1857_v7 = vld [vmem:[#allocation10 + $0x288] ss:$12 sps:$4 sm:$0xff]   ;;  %v1862_v8 = vld [vmem:[#allocation10 + $0x124] ss:$12 sps:$4 sm:$0xff]   ;;  %v1860_v10 = vld [vmem:[#allocation10 + $0x120] ss:$12 sps:$4 sm:$0xff]  }
  0xb8   :  { %1045 = vmatprep.subr.bf16.mxu0 %v1802_v31  ;;  %v1865_v9 = vld [vmem:[#allocation10 + $0x2a4] ss:$12 sps:$4 sm:$0xff]   ;;  %v1863_v11 = vld [vmem:[#allocation10 + $0x2a0] ss:$12 sps:$4 sm:$0xff]   ;;  %v1868_v12 = vld [vmem:[#allocation10 + $0x13c] ss:$12 sps:$4 sm:$0xff]  }
  0xb9   :  { %v1871_v13 = vld [vmem:[#allocation10 + $0x2bc] ss:$12 sps:$4 sm:$0xff]   ;;  %v1866_v14 = vld [vmem:[#allocation10 + $0x138] ss:$12 sps:$4 sm:$0xff]   ;;  %v1874_v17 = vld [vmem:[#allocation10 + $0x154] ss:$12 sps:$4 sm:$0xff]  }
  0xba   :  { %1087 = vmatpush1.bf16.msra.mxu1 %v1803_v34  ;;  %v1869_v15 = vld [vmem:[#allocation10 + $0x2b8] ss:$12 sps:$4 sm:$0xff]   ;;  %v1877_v18 = vld [vmem:[#allocation10 + $0x2d4] ss:$12 sps:$4 sm:$0xff]   ;;  %v1872_v19 = vld [vmem:[#allocation10 + $0x150] ss:$12 sps:$4 sm:$0xff]  }
  0xbb   :  { %1046 = vmatpush1.bf16.msra.mxu0 %v1800_v33  ;;  %1088 = vmatprep.subr.bf16.mxu1 %v1811_v36  ;;  %v1875_v20 = vld [vmem:[#allocation10 + $0x2d0] ss:$12 sps:$4 sm:$0xff]   ;;  %v1880_v21 = vld [vmem:[#allocation10 + $0x16c] ss:$12 sps:$4 sm:$0xff]   ;;  %v1878_v23 = vld [vmem:[#allocation10 + $0x168] ss:$12 sps:$4 sm:$0xff]  }
  0xbc   :  { %1047 = vmatprep.subr.bf16.mxu0 %v1808_v35  ;;  %v1883_v22 = vld [vmem:[#allocation10 + $0x2ec] ss:$12 sps:$4 sm:$0xff]   ;;  %v1881_v24 = vld [vmem:[#allocation10 + $0x2e8] ss:$12 sps:$4 sm:$0xff]   ;;  %v156_v27 = vsub.s32 0, %v2364_v4  ;;  %v164_v28 = vsub.s32 2, %v2364_v4 }
  0xbd   :  { %v1884_v25 = vld [vmem:[#allocation10 + $0xc8] ss:$12 sps:$4 sm:$0xff]   ;;  %v152_v29 = vld [vmem:[#allocation8] sm:$0xf]  ;;  %v160_v30 = vsub.s32 1, %v2364_v4  ;;  %v168_v31 = vsub.s32 3, %v2364_v4 }
  0xbe   :  { %1089 = vmatpush1.bf16.msra.mxu1 %v1809_v38  ;;  %v1885_v26 = vld [vmem:[#allocation10 + $0x248] ss:$12 sps:$4 sm:$0xff]   ;;  %v157_v32 = vrot.slane %v152_v29, %v156_v27  ;;  %v165_v33 = vrot.slane %v152_v29, %v164_v28  ;;  %s1515_s18 = sshll.u32 %s2191_s8, 4  ;;  %s1516_s18 = int_to_ptr.vmem [resolvable:$true] %s1515_s18 }
  0xbf   :  { %1048 = vmatpush1.bf16.msra.mxu0 %v1806_v37  ;;  %1090 = vmatprep.subr.bf16.mxu1 %v1817_v40  ;;  %v161_v34 = vrot.slane %v152_v29, %v160_v30  ;;  %v169_v35 = vrot.slane %v152_v29, %v168_v31  ;;  %v1911_v29 = vld [vmem:[#allocation10 + $0x218] ss:$12 sps:$4 sm:$0xff]   ;;  %v1912_v31 = vld [vmem:[#allocation10 + $0x170] ss:$12 sps:$4 sm:$0xff]   ;;  %s2138_s7 = scalar_lea.vmem %s1516_s18, 128  ;;  %p2143_p3 = scmp.lt.s32.totalorder %s1516_s18, %s1516_s18 }
  0xc0   :  { %1049 = vmatprep.subr.bf16.mxu0 %v1814_v39  ;;  %p2139_p2 = scmp.ne.s32.totalorder %s1516_s18, %s2138_s7  ;;  %p2144_p4 = scmp.lt.s32.totalorder %s2138_s7, %s2138_s7 }
  0xc2   :  { %1091 = vmatpush1.bf16.msra.mxu1 %v1815_v42  ;;  %p2145_p5 = por %p2144_p4, %p2143_p3 }
  0xc3   :  { %1050 = vmatpush1.bf16.msra.mxu0 %v1812_v41  ;;  %1092 = vmatprep.subr.bf16.mxu1 %v1823_v44 }
  0xc4   :  { %1051 = vmatprep.subr.bf16.mxu0 %v1820_v43  ;;  %p2146_p6 = pnand %p2145_p5, %p2139_p2 }
  0xc6   :  { %1093 = vmatpush1.bf16.msra.mxu1 %v1821_v46 }
  0xc7   :  { %1052 = vmatpush1.bf16.msra.mxu0 %v1818_v45  ;;  %1094 = vmatprep.subr.bf16.mxu1 %v1829_v48 }
  0xc8   :  { %1053 = vmatprep.subr.bf16.mxu0 %v1826_v47 }
  0xca   :  { %1095 = vmatpush1.bf16.msra.mxu1 %v1827_v50 }
  0xcb   :  { %1054 = vmatpush1.bf16.msra.mxu0 %v1824_v49  ;;  %1096 = vmatprep.subr.bf16.mxu1 %v1835_v52 }
  0xcc   :  { %1055 = vmatprep.subr.bf16.mxu0 %v1832_v51 }
  0xce   :  { %1097 = vmatpush1.bf16.msra.mxu1 %v1833_v54 }
  0xcf   :  { %1056 = vmatpush1.bf16.msra.mxu0 %v1830_v53  ;;  %1098 = vmatprep.subr.bf16.mxu1 %v1841_v56  ;;  %v1887_v56 = vld [vmem:[#allocation10 + $0x188] ss:$12 sps:$4 sm:$0xff]  }
  0xd0   :  { %1057 = vmatprep.subr.bf16.mxu0 %v1838_v55  ;;  %v1886_v55 = vld [vmem:[#allocation10 + $0x8] ss:$12 sps:$4 sm:$0xff]  }
  0xd2   :  { %1099 = vmatpush1.bf16.msra.mxu1 %v1839_v58  ;;  %v1888_v58 = vld [vmem:[#allocation10 + $0xe0] ss:$12 sps:$4 sm:$0xff]  }
  0xd3   :  { %1058 = vmatpush1.bf16.msra.mxu0 %v1836_v57  ;;  %1100 = vmatprep.subr.bf16.mxu1 %v1847_v60 }
  0xd4   :  { %1059 = vmatprep.subr.bf16.mxu0 %v1844_v59  ;;  %v1889_v59 = vld [vmem:[#allocation10 + $0x260] ss:$12 sps:$4 sm:$0xff]  }
  0xd6   :  { %1101 = vmatpush1.bf16.msra.mxu1 %v1845_v62 }
  0xd7   :  { %1060 = vmatpush1.bf16.msra.mxu0 %v1842_v61  ;;  %1102 = vmatprep.subr.bf16.mxu1 %v1853_v0  ;;  %v1890_v0 = vld [vmem:[#allocation10 + $0x20] ss:$12 sps:$4 sm:$0xff]  }
  0xd8   :  { %1061 = vmatprep.subr.bf16.mxu0 %v1850_v63 }
  0xda   :  { %1103 = vmatpush1.bf16.msra.mxu1 %v1851_v2 }
  0xdb   :  { %1062 = vmatpush1.bf16.msra.mxu0 %v1848_v1  ;;  %1104 = vmatprep.subr.bf16.mxu1 %v1859_v5  ;;  %v1891_v1 = vld [vmem:[#allocation10 + $0x1a0] ss:$12 sps:$4 sm:$0xff]   ;;  %v1892_v5 = vld [vmem:[#allocation10 + $0xf8] ss:$12 sps:$4 sm:$0xff]  }
  0xdc   :  { %1063 = vmatprep.subr.bf16.mxu0 %v1856_v3 }
  0xde   :  { %1105 = vmatpush1.bf16.msra.mxu1 %v1857_v7 }
  0xdf   :  { %1064 = vmatpush1.bf16.msra.mxu0 %v1854_v6  ;;  %1106 = vmatprep.subr.bf16.mxu1 %v1865_v9  ;;  %v1893_v6 = vld [vmem:[#allocation10 + $0x278] ss:$12 sps:$4 sm:$0xff]  }
  0xe0   :  { %1065 = vmatprep.subr.bf16.mxu0 %v1862_v8  ;;  %v1894_v9 = vld [vmem:[#allocation10 + $0x38] ss:$12 sps:$4 sm:$0xff]  }
  0xe2   :  { %1107 = vmatpush1.bf16.msra.mxu1 %v1863_v11  ;;  %v1896_v11 = vld [vmem:[#allocation10 + $0x110] ss:$12 sps:$4 sm:$0xff]  }
  0xe3   :  { %1066 = vmatpush1.bf16.msra.mxu0 %v1860_v10  ;;  %1108 = vmatprep.subr.bf16.mxu1 %v1871_v13  ;;  %v1895_v10 = vld [vmem:[#allocation10 + $0x1b8] ss:$12 sps:$4 sm:$0xff]   ;;  %v1898_v13 = vld [vmem:[#allocation10 + $0x50] ss:$12 sps:$4 sm:$0xff]  }
  0xe4   :  { %1067 = vmatprep.subr.bf16.mxu0 %v1868_v12  ;;  %v1897_v12 = vld [vmem:[#allocation10 + $0x290] ss:$12 sps:$4 sm:$0xff]  }
  0xe6   :  { %1109 = vmatpush1.bf16.msra.mxu1 %v1869_v15  ;;  %v1900_v15 = vld [vmem:[#allocation10 + $0x128] ss:$12 sps:$4 sm:$0xff]  }
  0xe7   :  { %1068 = vmatpush1.bf16.msra.mxu0 %v1866_v14  ;;  %1110 = vmatprep.subr.bf16.mxu1 %v1877_v18  ;;  %v1899_v14 = vld [vmem:[#allocation10 + $0x1d0] ss:$12 sps:$4 sm:$0xff]   ;;  %v1902_v18 = vld [vmem:[#allocation10 + $0x68] ss:$12 sps:$4 sm:$0xff]  }
  0xe8   :  { %1069 = vmatprep.subr.bf16.mxu0 %v1874_v17  ;;  %v1901_v17 = vld [vmem:[#allocation10 + $0x2a8] ss:$12 sps:$4 sm:$0xff]  }
  0xea   :  { %1111 = vmatpush1.bf16.msra.mxu1 %v1875_v20  ;;  %v1904_v20 = vld [vmem:[#allocation10 + $0x140] ss:$12 sps:$4 sm:$0xff]  }
  0xeb   :  { %1070 = vmatpush1.bf16.msra.mxu0 %v1872_v19  ;;  %1112 = vmatprep.subr.bf16.mxu1 %v1883_v22  ;;  %v1903_v19 = vld [vmem:[#allocation10 + $0x1e8] ss:$12 sps:$4 sm:$0xff]   ;;  %v1906_v22 = vld [vmem:[#allocation10 + $0x80] ss:$12 sps:$4 sm:$0xff]  }
  0xec   :  { %1071 = vmatprep.subr.bf16.mxu0 %v1880_v21  ;;  %v1905_v21 = vld [vmem:[#allocation10 + $0x2c0] ss:$12 sps:$4 sm:$0xff]  }
  0xee   :  { %1113 = vmatpush1.bf16.msra.mxu1 %v1881_v24  ;;  %v1908_v24 = vld [vmem:[#allocation10 + $0x158] ss:$12 sps:$4 sm:$0xff]  }
  0xef   :  { %1072 = vmatpush1.bf16.msra.mxu0 %v1878_v23  ;;  %1682 = vmatprep.subr.bf16.mxu1 %v1885_v26  ;;  %v1907_v23 = vld [vmem:[#allocation10 + $0x200] ss:$12 sps:$4 sm:$0xff]   ;;  %v1910_v26 = vld [vmem:[#allocation10 + $0x98] ss:$12 sps:$4 sm:$0xff]  }
  0xf0   :  { %1660 = vmatprep.subr.bf16.mxu0 %v1884_v25  ;;  %v1909_v25 = vld [vmem:[#allocation10 + $0x2d8] ss:$12 sps:$4 sm:$0xff]  }
 0x17c   :  { %v232_v36 = vpop.f32.mrb[0].mxu0  ;;  %v273_v37 = vpop.f32.mrb[0].mxu1 }
 0x17d   :  { %v233_v38 = vadd.f32 %v232_v36, %v157_v32  ;;  %v274_v39 = vadd.f32 %v273_v37, %v165_v33  ;;  %v234_v40 = vpop.f32.mrb[1].mxu0  ;;  %v275_v41 = vpop.f32.mrb[1].mxu1  ;;  %v1913_v32 = vld [vmem:[#allocation10 + $0x2f0] ss:$12 sps:$4 sm:$0xff]  }
 0x17e   :  { %v235_v42 = vadd.f32 %v234_v40, %v161_v34  ;;  %v276_v43 = vadd.f32 %v275_v41, %v169_v35  ;;  %v236_v44 = vpop.f32.mrb[2].mxu0  ;;  %v277_v45 = vpop.f32.mrb[2].mxu1  ;;  %v1914_v33 = vld [vmem:[#allocation10 + $0xb0] ss:$12 sps:$4 sm:$0xff]   ;;  %v1922_v41 = vld [vmem:[#allocation14 + $0x58] sm:$0xff]  }
 0x17f   :  { %v280_v46 = vmax.f32 %v233_v38, 0.0  ;;  %v282_v47 = vmax.f32 %v274_v39, 0.0  ;;  %v237_v48 = vpop.f32.mrb[3].mxu0  ;;  %v278_v49 = vpop.f32.mrb[3].mxu1  ;;  %v1915_v34 = vld [vmem:[#allocation10 + $0x230] ss:$12 sps:$4 sm:$0xff]  }
 0x180   :  { %v281_v50 = vmax.f32 %v235_v42, 0.0  ;;  %v283_v51 = vmax.f32 %v276_v43, 0.0  ;;  %v1916_v35 = vld [vmem:[#allocation14 + $0x40] sm:$0xff]   ;;  %v1918_v37 = vld [vmem:[#allocation14 + $0x48] sm:$0xff]   ;;  %v1920_v39 = vld [vmem:[#allocation14 + $0x50] sm:$0xff]  }
 0x181   :  { %v2383_v52 = vpack.c.bf16 %v282_v47, %v282_v47  ;;  %v2385_v57 = vpack.c.bf16 %v280_v46, %v280_v46  ;;  %v1917_v36 = vld [vmem:[#allocation14] sm:$0xff]   ;;  %v1919_v38 = vld [vmem:[#allocation14 + $0x8] sm:$0xff]   ;;  %v1921_v40 = vld [vmem:[#allocation14 + $0x10] sm:$0xff]  }
 0x182   :  { %v285_v53 = vpack.c.bf16 %v281_v50, %v281_v50  ;;  %v287_v54 = vpack.c.bf16 %v283_v51, %v283_v51  ;;  %v1923_v42 = vld [vmem:[#allocation14 + $0x18] sm:$0xff]   ;;  %v1924_v43 = vld [vmem:[#allocation14 + $0x60] sm:$0xff]   ;;  %v1926_v45 = vld [vmem:[#allocation14 + $0x68] sm:$0xff]  }
 0x183   :  { %v1925_v44 = vld [vmem:[#allocation14 + $0x20] sm:$0xff]   ;;  %v1927_v46 = vld [vmem:[#allocation14 + $0x28] sm:$0xff]   ;;  %v1928_v47 = vld [vmem:[#allocation14 + $0x70] sm:$0xff]  }
 0x184   :  { %1073 = vmatprep.mubr.bf16.mxu0 %v285_v53  ;;  %1114 = vmatprep.mubr.bf16.mxu1 %v287_v54  ;;  %v2389_v61 = vpop.f32.mrb[4].mxu1  ;;  %v1929_v48 = vld [vmem:[#allocation14 + $0x30] sm:$0xff]   ;;  %v1930_v49 = vld [vmem:[#allocation14 + $0x78] sm:$0xff]   ;;  %v1932_v51 = vld [vmem:[#allocation14 + $0x80] sm:$0xff]  }
 0x185   :  { %v2387_v60 = vpop.f32.mrb[4].mxu0  ;;  %1074 = vmatmul.mubr.bf16.vlgmr.msra.gmra.mrb[8].mxu0 %v2385_v57  ;;  %1115 = vmatmul.mubr.bf16.vlgmr.msra.gmra.mrb[8].mxu1 %v2383_v52  ;;  %v1739_v63 = vpop.f32.mrb[5].mxu1  ;;  %v1931_v50 = vld [vmem:[#allocation14 + $0x38] sm:$0xff]  }
 0x186   :  { %v2393_v62 = vpop.f32.mrb[5].mxu0  ;;  %1661 = vmatpush3.bf16.msra.mxu0 %v1886_v55  ;;  %1683 = vmatpush3.bf16.msra.mxu1 %v1887_v56  ;;  %v526_v3 = vpop.f32.mrb[6].mxu1  ;;  %v1936_v55 = vld [vmem:[#allocation14 + $0xa0] sm:$0xff]   ;;  %v1937_v56 = vld [vmem:[#allocation14 + $0xa8] sm:$0xff]  }
 0x187   :  { %v486_v2 = vpop.f32.mrb[6].mxu0  ;;  %1155 = vmatprep.mubr.bf16.mxu0 %v285_v53  ;;  %1195 = vmatprep.mubr.bf16.mxu1 %v287_v54  ;;  %v1740_v8 = vpop.f32.mrb[7].mxu1  ;;  %v1934_v53 = vld [vmem:[#allocation14 + $0x90] sm:$0xff]   ;;  %v1935_v54 = vld [vmem:[#allocation14 + $0x98] sm:$0xff]  }
 0x188   :  { %v487_v7 = vpop.f32.mrb[7].mxu0  ;;  %1662 = vmatprep.subr.bf16.mxu0 %v1888_v58  ;;  %1684 = vmatprep.subr.bf16.mxu1 %v1889_v59  ;;  %v1939_v58 = vld [vmem:[#allocation14 + $0xb8] sm:$0xff]  }
 0x189   :  { %v1203_v59 = vld [vmem:[#allocation13] sm:$0x7] }
 0x18a   :  { %1663 = vmatpush3.bf16.msra.mxu0 %v1890_v0  ;;  %1685 = vmatpush3.bf16.msra.mxu1 %v1891_v1  ;;  %v1208_v2 = vrot.slane %v1203_v59, %v156_v27  ;;  %v1212_v7 = vrot.slane %v1203_v59, %v160_v30 }
 0x18b   :  { %1664 = vmatprep.subr.bf16.mxu0 %v1892_v5  ;;  %1686 = vmatprep.subr.bf16.mxu1 %v1893_v6 }
 0x18e   :  { %1665 = vmatpush3.bf16.msra.mxu0 %v1894_v9  ;;  %1687 = vmatpush3.bf16.msra.mxu1 %v1895_v10 }
 0x18f   :  { %1666 = vmatprep.subr.bf16.mxu0 %v1896_v11  ;;  %1688 = vmatprep.subr.bf16.mxu1 %v1897_v12 }
 0x192   :  { %1667 = vmatpush3.bf16.msra.mxu0 %v1898_v13  ;;  %1689 = vmatpush3.bf16.msra.mxu1 %v1899_v14 }
 0x193   :  { %1668 = vmatprep.subr.bf16.mxu0 %v1900_v15  ;;  %1690 = vmatprep.subr.bf16.mxu1 %v1901_v17 }
 0x196   :  { %1669 = vmatpush3.bf16.msra.mxu0 %v1902_v18  ;;  %1691 = vmatpush3.bf16.msra.mxu1 %v1903_v19 }
 0x197   :  { %1670 = vmatprep.subr.bf16.mxu0 %v1904_v20  ;;  %1692 = vmatprep.subr.bf16.mxu1 %v1905_v21 }
 0x19a   :  { %1671 = vmatpush3.bf16.msra.mxu0 %v1906_v22  ;;  %1693 = vmatpush3.bf16.msra.mxu1 %v1907_v23 }
 0x19b   :  { %1672 = vmatprep.subr.bf16.mxu0 %v1908_v24  ;;  %1694 = vmatprep.subr.bf16.mxu1 %v1909_v25 }
 0x19e   :  { %1673 = vmatpush3.bf16.msra.mxu0 %v1910_v26  ;;  %1695 = vmatpush3.bf16.msra.mxu1 %v1911_v29  ;;  %v1216_v29 = vrot.slane %v1203_v59, %v164_v28 }
 0x19f   :  { %1674 = vmatprep.subr.bf16.mxu0 %v1912_v31  ;;  %1696 = vmatprep.subr.bf16.mxu1 %v1913_v32 }
 0x1a2   :  { %1675 = vmatpush3.bf16.msra.mxu0 %v1914_v33  ;;  %1697 = vmatpush3.bf16.msra.mxu1 %v1915_v34 }
 0x1a3   :  { %1704 = vmatprep.subr.bf16.mxu0 %v1916_v35  ;;  %1741 = vmatprep.subr.bf16.mxu1 %v2189_v16 }
 0x1a5   :  { %1156 = vmatmul.mubr.bf16.vlgmr.msra.gmra.mrb[12].mxu0 %v2385_v57  ;;  %1196 = vmatmul.mubr.bf16.vlgmr.msra.gmra.mrb[12].mxu1 %v2383_v52  ;;  %v1933_v52 = vld [vmem:[#allocation14 + $0x88] sm:$0xff]   ;;  %v1938_v57 = vld [vmem:[#allocation14 + $0xb0] sm:$0xff]  }
 0x1a6   :  { %1705 = vmatpush3.bf16.msra.mxu0 %v1917_v36  ;;  %1757 = vmatprep.mubr.msk.bf16.mxu1 %vm2190_vm2, %v2189_v16 }
 0x1a7   :  { %1706 = vmatprep.subr.bf16.mxu0 %v1918_v37  ;;  %1742 = vmatpush3.bf16.msra.mxu1 %v1932_v51 }
 0x1a8   :  { %1743 = vmatprep.subr.bf16.mxu1 %v2189_v16 }
 0x1aa   :  { %1707 = vmatpush3.bf16.msra.mxu0 %v1919_v38 }
 0x1ab   :  { %1708 = vmatprep.subr.bf16.mxu0 %v1920_v39  ;;  %1744 = vmatpush3.bf16.msra.mxu1 %v1933_v52 }
 0x1ac   :  { %1745 = vmatprep.subr.bf16.mxu1 %v2189_v16 }
 0x1ae   :  { %1709 = vmatpush3.bf16.msra.mxu0 %v1921_v40  ;;  %v1633_v40 = vld [vmem:[#allocation16] ss:$0 sm:$0xff] }
 0x1af   :  { %1710 = vmatprep.subr.bf16.mxu0 %v1922_v41  ;;  %1746 = vmatpush3.bf16.msra.mxu1 %v1934_v53 }
 0x1b0   :  { %1747 = vmatprep.subr.bf16.mxu1 %v2189_v16 }
 0x1b2   :  { %1711 = vmatpush3.bf16.msra.mxu0 %v1923_v42 }
 0x1b3   :  { %1712 = vmatprep.subr.bf16.mxu0 %v1924_v43  ;;  %1748 = vmatpush3.bf16.msra.mxu1 %v1935_v54 }
 0x1b4   :  { %1749 = vmatprep.subr.bf16.mxu1 %v2189_v16 }
 0x1b6   :  { %1713 = vmatpush3.bf16.msra.mxu0 %v1925_v44 }
 0x1b7   :  { %1714 = vmatprep.subr.bf16.mxu0 %v1926_v45  ;;  %1750 = vmatpush3.bf16.msra.mxu1 %v1936_v55 }
 0x1b8   :  { %1751 = vmatprep.subr.bf16.mxu1 %v2189_v16 }
 0x1ba   :  { %1715 = vmatpush3.bf16.msra.mxu0 %v1927_v46 }
 0x1bb   :  { %1716 = vmatprep.subr.bf16.mxu0 %v1928_v47  ;;  %1752 = vmatpush3.bf16.msra.mxu1 %v1937_v56 }
 0x1bc   :  { %1753 = vmatprep.subr.bf16.mxu1 %v2189_v16 }
 0x1be   :  { %1717 = vmatpush3.bf16.msra.mxu0 %v1929_v48 }
 0x1bf   :  { %1718 = vmatprep.subr.bf16.mxu0 %v1930_v49  ;;  %1754 = vmatpush3.bf16.msra.mxu1 %v1938_v57 }
 0x1c0   :  { %1755 = vmatprep.subr.bf16.mxu1 %v2189_v16 }
 0x1c2   :  { %1719 = vmatpush3.bf16.msra.mxu0 %v1931_v50 }
 0x1c3   :  { %1756 = vmatpush3.bf16.msra.mxu1 %v1939_v58 }
 0x258   :  { %v1075_v63 = vpop.f32.mrb[8].mxu0  ;;  %v1116_v0 = vpop.f32.mrb[8].mxu1 }
 0x259   :  { %v1076_v1 = vadd.f32 %v1075_v63, %v2387_v60  ;;  %v1077_v3 = vpop.f32.mrb[9].mxu0  ;;  %v1118_v5 = vpop.f32.mrb[9].mxu1 }
 0x25a   :  { %v1078_v6 = vadd.f32 %v1077_v3, %v2393_v62  ;;  %v1079_v8 = vpop.f32.mrb[10].mxu0  ;;  %v1120_v9 = vpop.f32.mrb[10].mxu1 }
 0x25b   :  { %v1117_v16 = vadd.f32 %v1116_v0, %v1076_v1  ;;  %v1080_v10 = vpop.f32.mrb[11].mxu0  ;;  %v1121_v11 = vpop.f32.mrb[11].mxu1 }
 0x25c   :  { %v1119_v12 = vadd.f32 %v1118_v5, %v1078_v6 }
 0x25d   :  { %v1220_v13 = vadd.f32 %v1208_v2, %v1117_v16 }
 0x25e   :  { %v1221_v14 = vadd.f32 %v1212_v7, %v1119_v12 }
 0x25f   :  { %v1223_v15 = vmax.f32 %v1220_v13, 0.0 }
 0x260   :  { %v1224_v60 = vmax.f32 %v1221_v14, 0.0 }
 0x261   :  { %v1226_v18 = vpack.c.bf16 %v1223_v15, %v1223_v15 }
 0x262   :  { %v1227_v17 = vpack.c.bf16 %v1224_v60, %v1224_v60 }
 0x264   :  { %1460 = vmatprep.mubr.bf16.mxu0 %v1227_v17 }
 0x265   :  { %1461 = vmatmul.mubr.bf16.vlgmr.msra.gmra.mrb[16].mxu0 %v1226_v18 }
 0x278   :  { %v1676_v27 = vpop.f32.mrb[12].mxu0  ;;  %v1698_v19 = vpop.f32.mrb[12].mxu1 }
 0x279   :  { %v1677_v62 = vpop.f32.mrb[13].mxu0  ;;  %v1699_v20 = vpop.f32.mrb[13].mxu1 }
 0x27a   :  { %v1678_v21 = vadd.f32 %v1677_v62, %v1676_v27  ;;  %v1700_v30 = vadd.f32 %v1699_v20, %v1698_v19  ;;  %v1679_v22 = vpop.f32.mrb[14].mxu0  ;;  %v1701_v23 = vpop.f32.mrb[14].mxu1 }
 0x27b   :  { %v1680_v24 = vpop.f32.mrb[15].mxu0  ;;  %v1702_v25 = vpop.f32.mrb[15].mxu1 }
 0x27c   :  { %v1158_v26 = vadd.f32 %v1678_v21, %v2389_v61 }
 0x27e   :  { %v1198_v31 = vadd.f32 %v1700_v30, %v1158_v26 }
 0x280   :  { %v1222_v32 = vadd.f32 %v1216_v29, %v1198_v31 }
 0x282   :  { %v1225_v33 = vmax.f32 %v1222_v32, 0.0 }
 0x284   :  { %v1228_v34 = vpack.c.bf16 %v1225_v33, %v1225_v33 }
 0x286   :  { %1758 = vmatmul.mubr.bf16.vlgmr.msra.gmra.mrb[16].mxu1 %v1228_v34 }
 0x338   :  { %v1720_v35 = vpop.f32.mrb[16].mxu0 }
 0x339   :  { %v1721_v36 = vpop.f32.mrb[17].mxu0 }
 0x33a   :  { %v1722_v37 = vadd.f32 %v1721_v36, %v1720_v35  ;;  %v1723_v38 = vpop.f32.mrb[18].mxu0 }
 0x33b   :  { %v1724_v39 = vpop.f32.mrb[19].mxu0 }
 0x33c   :  { %v1463_v41 = vadd.f32 %v1722_v37, %v1633_v40 }
 0x359   :  { %v1502_v42 = vpop.f32.mrb[16].mxu1 }
 0x35a   :  { %v1503_v43 = vadd.f32 %v1502_v42, %v1463_v41  ;;  %v1759_v61 = vpop.f32.mrb[17].mxu1 }
 0x35b   :  { %v1505_v4 = vpop.f32.mrb[18].mxu1 }
 0x35c   :  { %1508 = vst [vmem:[#allocation17] sm:$0xff] %v1503_v43  ;;  %v1760_v28 = vpop.f32.mrb[19].mxu1 }
 0x35d   :  { %2149 = shalt.err (!%p2146_p6)
}
 0x35e   :  { %s2150_s25 = scalar_lea.hbm %s2437_s9, 128 }
 0x35f   :  { %p2151_p7 = scmp.ne.s32.totalorder %s2437_s9, %s2150_s25  ;;  %p2154_p8 = scmp.lt.u32.totalorder %s2150_s25, %s2437_s9 }
 0x361   :  { %p2156_p9 = pnand %p2154_p8, %p2151_p7 }
 0x363   :  { %2159 = shalt.err (!%p2156_p9)
}
 0x364   :  { %1518 = dma.vmem_to_hbm [thread:$0]  %s1516_s18, 128, %s2437_s9, [#allocation4]  }
 0x365   :  { %2170 = dma.done.wait [#allocation4], 128  }
 0x366   :  { %2171 = vsyncadd [#allocation4], 4294967168 }
 0x367   :  { %1522 = vsyncpa [#allocation3], 1 }
 0x368   :  { %1523 = vsyncpa [#allocation6], 1 }
 0x369   :  { %1524 = vsyncpa [#allocation9], 1 }
 0x36a   :  { %1525 = vsyncpa [#allocation12], 1 }
 0x36b   :  { %1526 = vsyncpa [#allocation15], 1 }
 0x36c   :  { %1527 = vsyncpa [#allocation4], 1 }

</bundles_post_ra>
